<compile_context>
chip_gen: v6e
topology: v6e:2x2x1
jax: 0.10.0
libtpu: 0.0.40
codegen_flags: <defaults>
</compile_context>

<pallas_src>
import functools

import jax
import jax.numpy as jnp
from jax.experimental import pallas as pl
from jax.experimental.pallas import tpu as pltpu


def _round_up(x, m):
    return ((x + m - 1) // m) * m


def _leaky_relu(x, slope=0.2):
    return jnp.where(x >= 0.0, x, slope * x)


# ---------------------------------------------------------------------------
# Pallas kernel: fused tiled matmul + BN affine + optional LeakyReLU.
# Grid = (M tiles, N tiles, K tiles); K is the reduction axis (last).
# ---------------------------------------------------------------------------
def _conv_matmul_kernel(p_ref, w_ref, sc_ref, sh_ref, o_ref, acc_ref, *,
                        relu, slope):
    k = pl.program_id(2)

    @pl.when(k == 0)
    def _():
        acc_ref[...] = jnp.zeros_like(acc_ref)

    # bf16 x bf16 -> f32 accumulation on the MXU.
    acc_ref[...] += jnp.dot(p_ref[...], w_ref[...],
                            preferred_element_type=jnp.float32)

    @pl.when(k == pl.num_programs(2) - 1)
    def _():
        y = acc_ref[...] * sc_ref[...] + sh_ref[...]
        if relu:
            y = jnp.where(y >= 0.0, y, slope * y)
        o_ref[...] = y.astype(o_ref.dtype)


def _fused_matmul_bn_act(patches, w_mat, scale, shift, *, relu, slope=0.2,
                         tm=512, tn_max=256, tk_max=1024):
    """patches: (M, K) f32, w_mat: (K, OC) f32, scale/shift: (OC,) f32.

    Returns (M, OC) f32 of  act((patches @ w_mat) * scale + shift).
    """
    M, K = patches.shape
    _, OC = w_mat.shape

    # --- K (reduction) tiling: zero-pad K so every K tile is full. ---------
    nk = -(-K // tk_max)
    tk = _round_up(-(-K // nk), 128)
    Kp = nk * tk

    # --- N tiling: lane-dense multiples of 128. ----------------------------
    Np = _round_up(OC, 128)
    tn = tn_max if Np % tn_max == 0 else 128

    # --- M tiling: no padded copy of the patch matrix; ragged last block. --
    tm_eff = min(tm, M)
    grid_m = pl.cdiv(M, tm_eff)

    p = patches.astype(jnp.bfloat16)
    if Kp != K:
        p = jnp.pad(p, ((0, 0), (0, Kp - K)))
    w = jnp.pad(w_mat.astype(jnp.bfloat16), ((0, Kp - K), (0, Np - OC)))
    sc = jnp.pad(scale.reshape(1, OC).astype(jnp.float32),
                 ((0, 0), (0, Np - OC)))
    sh = jnp.pad(shift.reshape(1, OC).astype(jnp.float32),
                 ((0, 0), (0, Np - OC)))

    out = pl.pallas_call(
        functools.partial(_conv_matmul_kernel, relu=relu, slope=slope),
        out_shape=jax.ShapeDtypeStruct((M, Np), jnp.float32),
        grid_spec=pltpu.PrefetchScalarGridSpec(
            num_scalar_prefetch=0,
            grid=(grid_m, Np // tn, Kp // tk),
            in_specs=[
                pl.BlockSpec((tm_eff, tk), lambda i, j, k: (i, k)),
                pl.BlockSpec((tk, tn), lambda i, j, k: (k, j)),
                pl.BlockSpec((1, tn), lambda i, j, k: (0, j)),
                pl.BlockSpec((1, tn), lambda i, j, k: (0, j)),
            ],
            out_specs=pl.BlockSpec((tm_eff, tn), lambda i, j, k: (i, j)),
            scratch_shapes=[pltpu.VMEM((tm_eff, tn), jnp.float32)],
        ),
        compiler_params=pltpu.CompilerParams(
            dimension_semantics=("parallel", "parallel", "arbitrary")),
        cost_estimate=pl.CostEstimate(
            flops=2 * M * Kp * Np,
            transcendentals=0,
            bytes_accessed=p.size * 2 + w.size * 2 + M * Np * 4),
    )(p, w, sc, sh)

    return out[:, :OC]


# ---------------------------------------------------------------------------
# im2col in NHWC (C kept contiguous in lanes; feature order = (KH, KW, C)).
# ---------------------------------------------------------------------------
def _im2col_nhwc(x, kh, kw, stride, padding):
    N, H, W, C = x.shape
    xp = jnp.pad(x, ((0, 0), (padding, padding), (padding, padding), (0, 0)))
    OH = (H + 2 * padding - kh) // stride + 1
    OW = (W + 2 * padding - kw) // stride + 1
    slabs = [xp[:, i:i + stride * OH:stride, j:j + stride * OW:stride, :]
             for i in range(kh) for j in range(kw)]
    patches = jnp.concatenate(slabs, axis=-1) if len(slabs) > 1 else slabs[0]
    return patches.reshape(N * OH * OW, kh * kw * C), OH, OW


def _conv_bn_act(x_nhwc, weight, scale, shift, *, stride=1, padding=0,
                 relu=True, slope=0.2):
    N = x_nhwc.shape[0]
    OC, C, KH, KW = weight.shape
    patches, OH, OW = _im2col_nhwc(x_nhwc, KH, KW, stride, padding)
    # weight (OC, C, KH, KW) -> (KH, KW, C, OC) to match patch feature order.
    w_mat = weight.transpose(2, 3, 1, 0).reshape(KH * KW * C, OC)
    out = _fused_matmul_bn_act(patches, w_mat, scale, shift,
                               relu=relu, slope=slope)
    return out.reshape(N, OH, OW, OC)


# ---------------------------------------------------------------------------
# Parameter containers (PyTorch-default inits; BN folded for inference).
# ---------------------------------------------------------------------------
class ConvBN:
    def __init__(self, key, in_ch, out_ch, ksize=3, padding=1, relu=True):
        wkey, bkey = jax.random.split(key)
        fan_in = in_ch * ksize * ksize
        bound = 1.0 / (fan_in ** 0.5)        # PyTorch Conv2d default init
        self.weight = jax.random.uniform(
            wkey, (out_ch, in_ch, ksize, ksize), jnp.float32, -bound, bound)
        self.bias = jax.random.uniform(
            bkey, (out_ch,), jnp.float32, -bound, bound)
        # BatchNorm2d(out_ch) defaults: gamma=1, beta=0, mean=0, var=1.
        gamma = jnp.ones((out_ch,), jnp.float32)
        beta = jnp.zeros((out_ch,), jnp.float32)
        rmean = jnp.zeros((out_ch,), jnp.float32)
        rvar = jnp.ones((out_ch,), jnp.float32)
        eps = 1e-5
        self.scale = gamma / jnp.sqrt(rvar + eps)
        self.shift = beta + (self.bias - rmean) * self.scale
        self.padding = padding
        self.relu = relu

    def __call__(self, x_nhwc):
        return _conv_bn_act(x_nhwc, self.weight, self.scale, self.shift,
                            stride=1, padding=self.padding, relu=self.relu)


class ResBlock:
    def __init__(self, key, in_ch, out_ch):
        k1, k2, k3 = jax.random.split(key, 3)
        self.conv1 = ConvBN(k1, in_ch, out_ch, 3, 1, relu=True)
        self.conv2 = ConvBN(k2, out_ch, out_ch, 3, 1, relu=True)
        self.extra = (ConvBN(k3, in_ch, out_ch, 1, 0, relu=False)
                      if in_ch != out_ch else None)

    def __call__(self, x):
        h = self.conv2(self.conv1(x))
        s = self.extra(x) if self.extra is not None else x
        # Residual add + LeakyReLU glue kept in plain JAX (elementwise).
        return _leaky_relu(h + s)


class ResNetPallas:
    def __init__(self, key, in_ch, out_ch):
        ks = jax.random.split(key, 7)
        self.conv = ConvBN(ks[0], in_ch, out_ch, 3, 1, relu=True)
        self.conv_x = ConvBN(ks[1], in_ch, 1024, 3, 1, relu=True)
        self.blk1 = ResBlock(ks[2], out_ch, 128)
        self.blk2 = ResBlock(ks[3], 128, 256)
        self.blk3 = ResBlock(ks[4], 256, 512)
        self.blk4 = ResBlock(ks[5], 512, 1024)
        self.out = ConvBN(ks[6], 1024, out_ch, 3, 1, relu=True)

    def __call__(self, x_nchw):
        # NCHW -> NHWC once at the boundary; all internal layers stay NHWC.
        x = jnp.transpose(x_nchw, (0, 2, 3, 1))
        out = self.conv(x)
        xx = self.conv_x(x)
        out = self.blk4(self.blk3(self.blk2(self.blk1(out))))
        out = _leaky_relu(xx + out)
        out = self.out(out)
        return jnp.transpose(out, (0, 3, 1, 2))   # back to NCHW


# ---------------------------------------------------------------------------
# Pure-JAX (XLA conv) reference with the same bf16 input quantization.
# ---------------------------------------------------------------------------
def _ref_conv(layer, x_nchw):
    xq = x_nchw.astype(jnp.bfloat16).astype(jnp.float32)
    wq = layer.weight.astype(jnp.bfloat16).astype(jnp.float32)
    pad = layer.padding
    y = jax.lax.conv_general_dilated(
        xq, wq, window_strides=(1, 1), padding=[(pad, pad), (pad, pad)],
        dimension_numbers=("NCHW", "OIHW", "NCHW"),
        preferred_element_type=jnp.float32)
    y = y * layer.scale.reshape(1, -1, 1, 1) + layer.shift.reshape(1, -1, 1, 1)
    return _leaky_relu(y) if layer.relu else y


def _ref_block(blk, x):
    h = _ref_conv(blk.conv2, _ref_conv(blk.conv1, x))
    s = _ref_conv(blk.extra, x) if blk.extra is not None else x
    return _leaky_relu(h + s)


def _reference_forward(model, x):
    out = _ref_conv(model.conv, x)
    xx = _ref_conv(model.conv_x, x)
    out = _ref_block(model.blk1, out)
    out = _ref_block(model.blk2, out)
    out = _ref_block(model.blk3, out)
    out = _ref_block(model.blk4, out)
    out = _leaky_relu(xx + out)
    return _ref_conv(model.out, out)


# ---------------------------------------------------------------------------
if __name__ == "__main__":
    key = jax.random.PRNGKey(0)
    k_param, k_x = jax.random.split(key)

    # Small shapes: batch=2, in_channel=4, out_channel=8, spatial=16.
    N, C_IN, C_OUT, H, W = 2, 4, 8, 16, 16

    model = ResNetPallas(k_param, C_IN, C_OUT)
    x = jax.random.normal(k_x, (N, C_IN, H, W), jnp.float32)

    y = jax.block_until_ready(model(x))
    assert y.shape == (N, C_OUT, H, W), y.shape

    y_ref = jax.block_until_ready(_reference_forward(model, x))
    rel_err = float(jnp.max(jnp.abs(y - y_ref)) /
                    (jnp.max(jnp.abs(y_ref)) + 1e-6))
    assert rel_err < 2e-2, rel_err

    print("KERNEL_OK")
</pallas_src>

<mosaic_0001>
module attributes {stable_mosaic.version = 11 : i64} {
  func.func @_conv_matmul_kernel(%arg0: i32, %arg1: i32, %arg2: i32, %arg3: memref<512x128xbf16, #tpu.memory_space<vmem>>, %arg4: memref<128x128xbf16, #tpu.memory_space<vmem>>, %arg5: memref<1x128xf32, #tpu.memory_space<vmem>>, %arg6: memref<1x128xf32, #tpu.memory_space<vmem>>, %arg7: memref<512x128xf32, #tpu.memory_space<vmem>>, %arg8: memref<512x128xf32, #tpu.memory_space<vmem>>) attributes {dimension_semantics = [#tpu.dimension_semantics<parallel>, #tpu.dimension_semantics<parallel>, #tpu.dimension_semantics<arbitrary>], iteration_bounds = array<i64: 1, 1, 1>, scalar_prefetch = 0 : i64, scratch_operands = 1 : i64, tpu.core_type = #tpu.core_type<tc>, window_params = [{transform_indices = @transform_0, window_bounds = array<i64: 512, 128>}, {transform_indices = @transform_1, window_bounds = array<i64: 128, 128>}, {transform_indices = @transform_2, window_bounds = array<i64: 1, 128>}, {transform_indices = @transform_3, window_bounds = array<i64: 1, 128>}, {transform_indices = @transform_4, window_bounds = array<i64: 512, 128>}]} {
    %c0_i32 = arith.constant 0 : i32
    %0 = arith.cmpi eq, %arg2, %c0_i32 : i32
    %1 = arith.extui %0 : i1 to i32
    %c0_i32_0 = arith.constant 0 : i32
    %2 = arith.cmpi ne, %1, %c0_i32_0 : i32
    scf.if %2 {
      %cst_10 = arith.constant 0.000000e+00 : f32
      %12 = vector.broadcast %cst_10 : f32 to vector<512x128xf32>
      %c0_11 = arith.constant 0 : index
      %c0_12 = arith.constant 0 : index
      %13 = vector.load %arg8[%c0_11, %c0_12] : memref<512x128xf32, #tpu.memory_space<vmem>>, vector<512x128xf32>
      tpu.vector_store %arg8[%c0_11, %c0_12], %12 {strides = array<i32>} : memref<512x128xf32, #tpu.memory_space<vmem>>, vector<512x128xf32>,
    } else {
    }
    %c0 = arith.constant 0 : index
    %c0_1 = arith.constant 0 : index
    %3 = vector.load %arg8[%c0, %c0_1] : memref<512x128xf32, #tpu.memory_space<vmem>>, vector<512x128xf32>
    %c0_2 = arith.constant 0 : index
    %c0_3 = arith.constant 0 : index
    %4 = vector.load %arg3[%c0_2, %c0_3] : memref<512x128xbf16, #tpu.memory_space<vmem>>, vector<512x128xbf16>
    %c0_4 = arith.constant 0 : index
    %c0_5 = arith.constant 0 : index
    %5 = vector.load %arg4[%c0_4, %c0_5] : memref<128x128xbf16, #tpu.memory_space<vmem>>, vector<128x128xbf16>
    %cst = arith.constant dense<0.000000e+00> : vector<512x128xf32>
    %6 = tpu.matmul %4, %5, %cst {dimension_numbers = #tpu.dot_dimension_numbers<[1], [0], [0], [1], [0, 0, 1, 1], [], []>} : vector<512x128xbf16>, vector<128x128xbf16>, vector<512x128xf32> -> vector<512x128xf32>
    %7 = arith.addf %3, %6 : vector<512x128xf32>
    %c0_6 = arith.constant 0 : index
    %c0_7 = arith.constant 0 : index
    %8 = vector.load %arg8[%c0_6, %c0_7] : memref<512x128xf32, #tpu.memory_space<vmem>>, vector<512x128xf32>
    tpu.vector_store %arg8[%c0_6, %c0_7], %7 {strides = array<i32>} : memref<512x128xf32, #tpu.memory_space<vmem>>, vector<512x128xf32>,
    %c0_i32_8 = arith.constant 0 : i32
    %9 = arith.cmpi eq, %arg2, %c0_i32_8 : i32
    %10 = arith.extui %9 : i1 to i32
    %c0_i32_9 = arith.constant 0 : i32
    %11 = arith.cmpi ne, %10, %c0_i32_9 : i32
    scf.if %11 {
      %c0_10 = arith.constant 0 : index
      %c0_11 = arith.constant 0 : index
      %12 = vector.load %arg8[%c0_10, %c0_11] : memref<512x128xf32, #tpu.memory_space<vmem>>, vector<512x128xf32>
      %c0_12 = arith.constant 0 : index
      %c0_13 = arith.constant 0 : index
      %13 = vector.load %arg5[%c0_12, %c0_13] : memref<1x128xf32, #tpu.memory_space<vmem>>, vector<1x128xf32>
      %14 = vector.broadcast %13 : vector<1x128xf32> to vector<512x128xf32>
      %15 = arith.mulf %12, %14 : vector<512x128xf32>
      %c0_14 = arith.constant 0 : index
      %c0_15 = arith.constant 0 : index
      %16 = vector.load %arg6[%c0_14, %c0_15] : memref<1x128xf32, #tpu.memory_space<vmem>>, vector<1x128xf32>
      %17 = vector.broadcast %16 : vector<1x128xf32> to vector<512x128xf32>
      %18 = arith.addf %15, %17 : vector<512x128xf32>
      %cst_16 = arith.constant 0.000000e+00 : f32
      %19 = vector.broadcast %cst_16 : f32 to vector<512x128xf32>
      %20 = arith.cmpf oge, %18, %19 : vector<512x128xf32>
      %cst_17 = arith.constant 2.000000e-01 : f32
      %21 = vector.broadcast %cst_17 : f32 to vector<512x128xf32>
      %22 = arith.mulf %21, %18 : vector<512x128xf32>
      %23 = arith.select %20, %18, %22 : vector<512x128xi1>, vector<512x128xf32>
      %c0_18 = arith.constant 0 : index
      %c0_19 = arith.constant 0 : index
      %24 = vector.load %arg7[%c0_18, %c0_19] : memref<512x128xf32, #tpu.memory_space<vmem>>, vector<512x128xf32>
      tpu.vector_store %arg7[%c0_18, %c0_19], %23 {strides = array<i32>} : memref<512x128xf32, #tpu.memory_space<vmem>>, vector<512x128xf32>,
    } else {
    }
    return
  }
  func.func @transform_0(%arg0: i32, %arg1: i32, %arg2: i32) -> (i32, i32) {
    %c0_i32 = arith.constant 0 : i32
    return %arg0, %arg2 : i32, i32
  }
  func.func @transform_1(%arg0: i32, %arg1: i32, %arg2: i32) -> (i32, i32) {
    %c0_i32 = arith.constant 0 : i32
    return %arg2, %arg1 : i32, i32
  }
  func.func @transform_2(%arg0: i32, %arg1: i32, %arg2: i32) -> (i32, i32) {
    %c0_i32 = arith.constant 0 : i32
    %c0_i32_0 = arith.constant 0 : i32
    return %c0_i32, %arg1 : i32, i32
  }
  func.func @transform_3(%arg0: i32, %arg1: i32, %arg2: i32) -> (i32, i32) {
    %c0_i32 = arith.constant 0 : i32
    %c0_i32_0 = arith.constant 0 : i32
    return %c0_i32, %arg1 : i32, i32
  }
  func.func @transform_4(%arg0: i32, %arg1: i32, %arg2: i32) -> (i32, i32) {
    %c0_i32 = arith.constant 0 : i32
    return %arg0, %arg1 : i32, i32
  }
}

</mosaic_0001>

<bundles_post_ra>
// kernel: tpu_custom_call.1
= control target key start
LH: loop header
LB: loop body
LE: loop exit
PB: predicated region body
PF: predicated region fallthrough
CT: control target
= control target key end

     0   :  { %9 = vsyncpa [#allocation4], 0  ;;  %s1890_s0 = inlined_call_operand.hbm [shape: bf16[512,128], index: 0, kind: input, shape index: {}]   ;;  %s1891_s1 = inlined_call_operand.hbm [shape: bf16[128,128], index: 1, kind: input, shape index: {}]   ;;  %s1892_s2 = inlined_call_operand.vmem [shape: f32[1,128], index: 2, kind: input, shape index: {}]   ;;  %s1893_s3 = inlined_call_operand.vmem [shape: f32[1,128], index: 3, kind: input, shape index: {}]   ;;  %s1894_s4 = inlined_call_operand.hbm [shape: f32[512,128], index: 4, kind: output, shape index: {}]  }
   0x1   :  { %10 = vsyncpa [#allocation7], 0 }
   0x2   :  { %11 = vsyncpa [#allocation5], 0  ;;  %s1690_s15 = smov [#allocation3]  }
   0x3   :  { %s17_s16 = sshll.u32 %s1690_s15, 4  ;;  %s18_s16 = int_to_ptr.vmem [resolvable:$true] %s17_s16 }
   0x4   :  { %s1632_s17 = scalar_lea.vmem %s18_s16, 4096  ;;  %p1637_p1 = scmp.lt.s32.totalorder %s18_s16, %s18_s16 }
   0x5   :  { %p1633_p0 = scmp.ne.s32.totalorder %s18_s16, %s1632_s17  ;;  %p1638_p2 = scmp.lt.s32.totalorder %s1632_s17, %s1632_s17 }
   0x7   :  { %p1639_p3 = por %p1638_p2, %p1637_p1 }
   0x9   :  { %p1640_p4 = pnand %p1639_p3, %p1633_p0 }
   0xb   :  { %1643 = shalt.err (!%p1640_p4)
}
   0xc   :  { %s1691_s18 = smov 64   ;;  %s1692_s19 = smov 4  }
   0xd   :  { %23 = dma.hbm_to_vmem [thread:$0]  %s1890_s0, 4096, %s18_s16, [#allocation4], %s1691_s18, %s1691_s18, %s1692_s19  }
   0xe   :  { %s1693_s22 = smov [#allocation6]  }
   0xf   :  { %s29_s23 = sshll.u32 %s1693_s22, 4  ;;  %s30_s23 = int_to_ptr.vmem [resolvable:$true] %s29_s23 }
  0x10   :  { %s1652_s24 = scalar_lea.vmem %s30_s23, 1024  ;;  %p1657_p6 = scmp.lt.s32.totalorder %s30_s23, %s30_s23 }
  0x11   :  { %p1653_p5 = scmp.ne.s32.totalorder %s30_s23, %s1652_s24  ;;  %p1658_p7 = scmp.lt.s32.totalorder %s1652_s24, %s1652_s24 }
  0x13   :  { %p1659_p8 = por %p1658_p7, %p1657_p6 }
  0x15   :  { %p1660_p9 = pnand %p1659_p8, %p1653_p5 }
  0x17   :  { %1663 = shalt.err (!%p1660_p9)
}
  0x18   :  { %35 = dma.hbm_to_vmem [thread:$0]  %s1891_s1, 1024, %s30_s23, [#allocation7], %s1691_s18, %s1691_s18, %s1692_s19  }
  0x19   :  { %1684 = dma.done.wait [#allocation4], 4096  }
  0x1a   :  { %1685 = vsyncadd [#allocation4], 4294963200 }
  0x1b   :  { %1686 = dma.done.wait [#allocation7], 1024  }
  0x1c   :  { %1687 = vsyncadd [#allocation7], 4294966272  ;;  %v1584_v0 = vld [vmem:[#allocation6 + $0x38] sm:$0xff]   ;;  %v1585_v1 = vld [vmem:[#allocation6 + $0x30] sm:$0xff]  }
  0x1d   :  { %1481 = vmatprep.subr.bf16.mxu0 %v1584_v0  ;;  %1561 = vmatprep.subr.bf16.mxu1 %v1584_v0  ;;  %v1586_v2 = vld [vmem:[#allocation6 + $0x28] sm:$0xff]   ;;  %v1587_v3 = vld [vmem:[#allocation6 + $0x20] sm:$0xff]   ;;  %v1588_v6 = vld [vmem:[#allocation6 + $0x18] sm:$0xff]  }
  0x1e   :  { %1482 = vmatpush3.bf16.msra.mxu0 %v1584_v0  ;;  %1569 = vmatpush3.bf16.msra.mxu1 %v1584_v0  ;;  %v1592_v4 = vld [vmem:[#allocation3] sm:$0xff]   ;;  %v1589_v7 = vld [vmem:[#allocation6 + $0x10] sm:$0xff]   ;;  %v1590_v8 = vld [vmem:[#allocation6 + $0x8] sm:$0xff]  }
  0x1f   :  { %1483 = vmatprep.subr.bf16.mxu0 %v1585_v1  ;;  %1562 = vmatprep.subr.bf16.mxu1 %v1585_v1  ;;  %v1593_v5 = vld [vmem:[#allocation3 + $0x80] sm:$0xff]   ;;  %v1594_v10 = vld [vmem:[#allocation3 + $0x8] sm:$0xff]   ;;  %v1596_v12 = vld [vmem:[#allocation3 + $0x10] sm:$0xff]  }
  0x20   :  { %1497 = vmatprep.mubr.bf16.mxu0 %v1592_v4  ;;  %1529 = vmatprep.mubr.bf16.mxu1 %v1593_v5  ;;  %v1591_v9 = vld [vmem:[#allocation6] sm:$0xff]   ;;  %v1595_v11 = vld [vmem:[#allocation3 + $0x88] sm:$0xff]   ;;  %v1597_v13 = vld [vmem:[#allocation3 + $0x90] sm:$0xff]  }
  0x21   :  { %v1598_v14 = vld [vmem:[#allocation3 + $0x18] sm:$0xff]   ;;  %v1600_v16 = vld [vmem:[#allocation3 + $0x20] sm:$0xff]   ;;  %v1602_v18 = vld [vmem:[#allocation3 + $0x28] sm:$0xff]  }
  0x22   :  { %1484 = vmatpush3.bf16.msra.mxu0 %v1585_v1  ;;  %1570 = vmatpush3.bf16.msra.mxu1 %v1585_v1  ;;  %v1599_v15 = vld [vmem:[#allocation3 + $0x98] sm:$0xff]   ;;  %v1601_v17 = vld [vmem:[#allocation3 + $0xa0] sm:$0xff]   ;;  %v1603_v19 = vld [vmem:[#allocation3 + $0xa8] sm:$0xff]  }
  0x23   :  { %1485 = vmatprep.subr.bf16.mxu0 %v1586_v2  ;;  %1563 = vmatprep.subr.bf16.mxu1 %v1586_v2  ;;  %v1604_v20 = vld [vmem:[#allocation3 + $0x30] sm:$0xff]   ;;  %v1606_v22 = vld [vmem:[#allocation3 + $0x38] sm:$0xff]   ;;  %v1608_v24 = vld [vmem:[#allocation3 + $0x40] sm:$0xff]  }
  0x24   :  { %v1605_v21 = vld [vmem:[#allocation3 + $0xb0] sm:$0xff]   ;;  %v1607_v23 = vld [vmem:[#allocation3 + $0xb8] sm:$0xff]   ;;  %v1609_v25 = vld [vmem:[#allocation3 + $0xc0] sm:$0xff]  }
  0x25   :  { %v1610_v26 = vld [vmem:[#allocation3 + $0x48] sm:$0xff]   ;;  %v1612_v28 = vld [vmem:[#allocation3 + $0x50] sm:$0xff]   ;;  %v1614_v30 = vld [vmem:[#allocation3 + $0x58] sm:$0xff]  }
  0x26   :  { %1486 = vmatpush3.bf16.msra.mxu0 %v1586_v2  ;;  %1571 = vmatpush3.bf16.msra.mxu1 %v1586_v2  ;;  %v1611_v27 = vld [vmem:[#allocation3 + $0xc8] sm:$0xff]   ;;  %v1613_v29 = vld [vmem:[#allocation3 + $0xd0] sm:$0xff]   ;;  %v1615_v31 = vld [vmem:[#allocation3 + $0xd8] sm:$0xff]  }
  0x27   :  { %1487 = vmatprep.subr.bf16.mxu0 %v1587_v3  ;;  %1564 = vmatprep.subr.bf16.mxu1 %v1587_v3  ;;  %v1616_v32 = vld [vmem:[#allocation3 + $0x60] sm:$0xff]   ;;  %v1618_v34 = vld [vmem:[#allocation3 + $0x68] sm:$0xff]   ;;  %v1620_v36 = vld [vmem:[#allocation3 + $0x70] sm:$0xff]  }
  0x28   :  { %v1617_v33 = vld [vmem:[#allocation3 + $0xe0] sm:$0xff]   ;;  %v1619_v35 = vld [vmem:[#allocation3 + $0xe8] sm:$0xff]   ;;  %v1621_v37 = vld [vmem:[#allocation3 + $0xf0] sm:$0xff]  }
  0x29   :  { %v1622_v38 = vld [vmem:[#allocation3 + $0x78] sm:$0xff]   ;;  %v1731_v40 = vld [vmem:[%s1892_s2] ss:$0 sm:$0xff]  ;;  %s1694_s2 = smov [#allocation8]  }
  0x2a   :  { %1488 = vmatpush3.bf16.msra.mxu0 %v1587_v3  ;;  %1572 = vmatpush3.bf16.msra.mxu1 %v1587_v3  ;;  %v1623_v39 = vld [vmem:[#allocation3 + $0xf8] sm:$0xff]   ;;  %v1736_v42 = vld [vmem:[%s1893_s3] ss:$0 sm:$0xff]  ;;  %s1386_s3 = sshll.u32 %s1694_s2, 4  ;;  %s1387_s3 = int_to_ptr.vmem [resolvable:$true] %s1386_s3 }
  0x2b   :  { %1489 = vmatprep.subr.bf16.mxu0 %v1588_v6  ;;  %1565 = vmatprep.subr.bf16.mxu1 %v1588_v6  ;;  %s1664_s29 = scalar_lea.vmem %s1387_s3, 8192  ;;  %p1669_p11 = scmp.lt.s32.totalorder %s1387_s3, %s1387_s3 }
  0x2c   :  { %p1665_p10 = scmp.ne.s32.totalorder %s1387_s3, %s1664_s29  ;;  %p1670_p12 = scmp.lt.s32.totalorder %s1664_s29, %s1664_s29 }
  0x2e   :  { %1490 = vmatpush3.bf16.msra.mxu0 %v1588_v6  ;;  %1573 = vmatpush3.bf16.msra.mxu1 %v1588_v6  ;;  %p1671_p13 = por %p1670_p12, %p1669_p11 }
  0x2f   :  { %1491 = vmatprep.subr.bf16.mxu0 %v1589_v7  ;;  %1566 = vmatprep.subr.bf16.mxu1 %v1589_v7 }
  0x30   :  { %p1672_p0 = pnand %p1671_p13, %p1665_p10 }
  0x32   :  { %1492 = vmatpush3.bf16.msra.mxu0 %v1589_v7  ;;  %1574 = vmatpush3.bf16.msra.mxu1 %v1589_v7 }
  0x33   :  { %1493 = vmatprep.subr.bf16.mxu0 %v1590_v8  ;;  %1567 = vmatprep.subr.bf16.mxu1 %v1590_v8 }
  0x36   :  { %1494 = vmatpush3.bf16.msra.mxu0 %v1590_v8  ;;  %1575 = vmatpush3.bf16.msra.mxu1 %v1590_v8 }
  0x37   :  { %1495 = vmatprep.subr.bf16.mxu0 %v1591_v9  ;;  %1568 = vmatprep.subr.bf16.mxu1 %v1591_v9 }
  0x3a   :  { %1496 = vmatpush3.bf16.msra.mxu0 %v1591_v9  ;;  %1576 = vmatpush3.bf16.msra.mxu1 %v1591_v9 }
  0x3d   :  { %1498 = vmatmul.mubr.bf16.vlgmr.msra.gmra.mxu0 %v1594_v10  ;;  %1530 = vmatmul.mubr.bf16.vlgmr.msra.gmra.mxu1 %v1595_v11 }
  0x3e   :  { %1501 = vmatprep.mubr.bf16.mxu0 %v1596_v12  ;;  %1533 = vmatprep.mubr.bf16.mxu1 %v1597_v13 }
  0x45   :  { %1502 = vmatmul.mubr.bf16.gmra.mxu0 %v1598_v14  ;;  %1534 = vmatmul.mubr.bf16.gmra.mxu1 %v1599_v15 }
  0x46   :  { %1505 = vmatprep.mubr.bf16.mxu0 %v1600_v16  ;;  %1537 = vmatprep.mubr.bf16.mxu1 %v1601_v17 }
  0x4d   :  { %1506 = vmatmul.mubr.bf16.gmra.mxu0 %v1602_v18  ;;  %1538 = vmatmul.mubr.bf16.gmra.mxu1 %v1603_v19 }
  0x4e   :  { %1509 = vmatprep.mubr.bf16.mxu0 %v1604_v20  ;;  %1541 = vmatprep.mubr.bf16.mxu1 %v1605_v21 }
  0x55   :  { %1510 = vmatmul.mubr.bf16.gmra.mxu0 %v1606_v22  ;;  %1542 = vmatmul.mubr.bf16.gmra.mxu1 %v1607_v23 }
  0x56   :  { %1513 = vmatprep.mubr.bf16.mxu0 %v1608_v24  ;;  %1545 = vmatprep.mubr.bf16.mxu1 %v1609_v25 }
  0x5d   :  { %1514 = vmatmul.mubr.bf16.gmra.mxu0 %v1610_v26  ;;  %1546 = vmatmul.mubr.bf16.gmra.mxu1 %v1611_v27 }
  0x5e   :  { %1517 = vmatprep.mubr.bf16.mxu0 %v1612_v28  ;;  %1549 = vmatprep.mubr.bf16.mxu1 %v1613_v29 }
  0x65   :  { %1518 = vmatmul.mubr.bf16.gmra.mxu0 %v1614_v30  ;;  %1550 = vmatmul.mubr.bf16.gmra.mxu1 %v1615_v31 }
  0x66   :  { %1521 = vmatprep.mubr.bf16.mxu0 %v1616_v32  ;;  %1553 = vmatprep.mubr.bf16.mxu1 %v1617_v33 }
  0x6d   :  { %1522 = vmatmul.mubr.bf16.gmra.mxu0 %v1618_v34  ;;  %1554 = vmatmul.mubr.bf16.gmra.mxu1 %v1619_v35 }
  0x6e   :  { %1525 = vmatprep.mubr.bf16.mxu0 %v1620_v36  ;;  %1557 = vmatprep.mubr.bf16.mxu1 %v1621_v37 }
  0x75   :  { %1526 = vmatmul.mubr.bf16.gmra.mxu0 %v1622_v38  ;;  %1558 = vmatmul.mubr.bf16.gmra.mxu1 %v1623_v39 }
  0xfd   :  { %v1499_v41 = vpop.f32.mrf.mxu0  ;;  %v1531_v43 = vpop.f32.mrf.mxu1 }
  0xfe   :  { %v992_v44 = vmul.f32 %v1499_v41, %v1731_v40  ;;  %v1024_v45 = vmul.f32 %v1531_v43, %v1731_v40 }
  0xff   :  { %v533_v46 = vpop.f32.mrf.mxu0  ;;  %v661_v47 = vpop.f32.mrf.mxu1 }
 0x100   :  { %v1063_v48 = vadd.f32 %v1736_v42, %v992_v44  ;;  %v1095_v49 = vadd.f32 %v1736_v42, %v1024_v45  ;;  %v990_v50 = vmul.f32 %v1731_v40, %v533_v46  ;;  %v1022_v51 = vmul.f32 %v1731_v40, %v661_v47 }
 0x101   :  { %v1500_v52 = vpop.f32.mrf.mxu0  ;;  %v1532_v53 = vpop.f32.mrf.mxu1 }
 0x102   :  { %vm1127_vm0 = vcmp.ge.f32.partialorder %v1063_v48, 0.0  ;;  %v1191_v54 = vmul.f32 0.2, %v1063_v48  ;;  %vm1159_vm1 = vcmp.ge.f32.partialorder %v1095_v49, 0.0  ;;  %v1223_v55 = vmul.f32 0.2, %v1095_v49 }
 0x103   :  { %v1061_v56 = vadd.f32 %v1736_v42, %v990_v50  ;;  %v1093_v57 = vadd.f32 %v1736_v42, %v1022_v51  ;;  %v993_v58 = vmul.f32 %v1500_v52, %v1731_v40  ;;  %v1025_v59 = vmul.f32 %v1532_v53, %v1731_v40  ;;  %v536_v60 = vpop.f32.mrf.mxu0  ;;  %v664_v61 = vpop.f32.mrf.mxu1 }
 0x104   :  { %v1255_v62 = vsel %vm1127_vm0, %v1063_v48, %v1191_v54  ;;  %v1287_v63 = vsel %vm1159_vm1, %v1095_v49, %v1223_v55  ;;  %v991_v0 = vmul.f32 %v1731_v40, %v536_v60  ;;  %v1023_v1 = vmul.f32 %v1731_v40, %v664_v61 }
 0x105   :  { %1319 = vst [vmem:[#allocation8 + $0x10] sm:$0xff] %v1255_v62  ;;  %1351 = vst [vmem:[#allocation8 + $0x110] sm:$0xff] %v1287_v63  ;;  %vm1125_vm2 = vcmp.ge.f32.partialorder %v1061_v56, 0.0  ;;  %v1189_v2 = vmul.f32 0.2, %v1061_v56  ;;  %vm1157_vm3 = vcmp.ge.f32.partialorder %v1093_v57, 0.0  ;;  %v1503_v4 = vpop.f32.mrf.mxu0  ;;  %v1535_v5 = vpop.f32.mrf.mxu1  ;;  %v1064_v6 = vadd.f32 %v1736_v42, %v993_v58 }
 0x106   :  { %v1221_v3 = vmul.f32 0.2, %v1093_v57  ;;  %v1096_v7 = vadd.f32 %v1736_v42, %v1025_v59  ;;  %v1062_v8 = vadd.f32 %v1736_v42, %v991_v0  ;;  %v1094_v9 = vadd.f32 %v1736_v42, %v1023_v1 }
 0x107   :  { %v1253_v10 = vsel %vm1125_vm2, %v1061_v56, %v1189_v2  ;;  %v996_v12 = vmul.f32 %v1503_v4, %v1731_v40  ;;  %v1028_v13 = vmul.f32 %v1535_v5, %v1731_v40  ;;  %v549_v14 = vpop.f32.mrf.mxu0  ;;  %v677_v15 = vpop.f32.mrf.mxu1  ;;  %vm1128_vm4 = vcmp.ge.f32.partialorder %v1064_v6, 0.0 }
 0x108   :  { %v1285_v11 = vsel %vm1157_vm3, %v1093_v57, %v1221_v3  ;;  %1317 = vst [vmem:[#allocation8] sm:$0xff] %v1253_v10  ;;  %v1192_v16 = vmul.f32 0.2, %v1064_v6  ;;  %vm1160_vm5 = vcmp.ge.f32.partialorder %v1096_v7, 0.0  ;;  %v1224_v17 = vmul.f32 0.2, %v1096_v7 }
 0x109   :  { %1349 = vst [vmem:[#allocation8 + $0x100] sm:$0xff] %v1285_v11  ;;  %vm1126_vm6 = vcmp.ge.f32.partialorder %v1062_v8, 0.0  ;;  %v1190_v18 = vmul.f32 0.2, %v1062_v8  ;;  %vm1158_vm7 = vcmp.ge.f32.partialorder %v1094_v9, 0.0  ;;  %v1504_v20 = vpop.f32.mrf.mxu0  ;;  %v1536_v21 = vpop.f32.mrf.mxu1  ;;  %v1067_v24 = vadd.f32 %v1736_v42, %v996_v12 }
 0x10a   :  { %v1222_v19 = vmul.f32 0.2, %v1094_v9  ;;  %v1256_v22 = vsel %vm1128_vm4, %v1064_v6, %v1192_v16  ;;  %v1288_v23 = vsel %vm1160_vm5, %v1096_v7, %v1224_v17  ;;  %v1099_v25 = vadd.f32 %v1736_v42, %v1028_v13 }
 0x10b   :  { %1320 = vst [vmem:[#allocation8 + $0x18] sm:$0xff] %v1256_v22  ;;  %1352 = vst [vmem:[#allocation8 + $0x118] sm:$0xff] %v1288_v23  ;;  %v1254_v26 = vsel %vm1126_vm6, %v1062_v8, %v1190_v18  ;;  %v994_v28 = vmul.f32 %v1731_v40, %v549_v14  ;;  %v1026_v29 = vmul.f32 %v1731_v40, %v677_v15  ;;  %v552_v30 = vpop.f32.mrf.mxu0  ;;  %v680_v31 = vpop.f32.mrf.mxu1  ;;  %vm1131_vm8 = vcmp.ge.f32.partialorder %v1067_v24, 0.0 }
 0x10c   :  { %v1286_v27 = vsel %vm1158_vm7, %v1094_v9, %v1222_v19  ;;  %1318 = vst [vmem:[#allocation8 + $0x8] sm:$0xff] %v1254_v26  ;;  %v1195_v32 = vmul.f32 0.2, %v1067_v24  ;;  %vm1163_vm9 = vcmp.ge.f32.partialorder %v1099_v25, 0.0  ;;  %v1227_v33 = vmul.f32 0.2, %v1099_v25 }
 0x10d   :  { %1350 = vst [vmem:[#allocation8 + $0x108] sm:$0xff] %v1286_v27  ;;  %v1065_v34 = vadd.f32 %v1736_v42, %v994_v28  ;;  %v1097_v35 = vadd.f32 %v1736_v42, %v1026_v29  ;;  %v997_v36 = vmul.f32 %v1504_v20, %v1731_v40  ;;  %v1029_v37 = vmul.f32 %v1536_v21, %v1731_v40  ;;  %v1507_v38 = vpop.f32.mrf.mxu0  ;;  %v1539_v39 = vpop.f32.mrf.mxu1 }
 0x10e   :  { %v1259_v41 = vsel %vm1131_vm8, %v1067_v24, %v1195_v32  ;;  %v1291_v43 = vsel %vm1163_vm9, %v1099_v25, %v1227_v33  ;;  %v995_v44 = vmul.f32 %v1731_v40, %v552_v30  ;;  %v1027_v45 = vmul.f32 %v1731_v40, %v680_v31 }
 0x10f   :  { %1323 = vst [vmem:[#allocation8 + $0x30] sm:$0xff] %v1259_v41  ;;  %1355 = vst [vmem:[#allocation8 + $0x130] sm:$0xff] %v1291_v43  ;;  %vm1129_vm10 = vcmp.ge.f32.partialorder %v1065_v34, 0.0  ;;  %v1193_v46 = vmul.f32 0.2, %v1065_v34  ;;  %vm1161_vm11 = vcmp.ge.f32.partialorder %v1097_v35, 0.0  ;;  %v565_v48 = vpop.f32.mrf.mxu0  ;;  %v693_v49 = vpop.f32.mrf.mxu1  ;;  %v1068_v50 = vadd.f32 %v1736_v42, %v997_v36 }
 0x110   :  { %v1225_v47 = vmul.f32 0.2, %v1097_v35  ;;  %v1100_v51 = vadd.f32 %v1736_v42, %v1029_v37  ;;  %v1066_v52 = vadd.f32 %v1736_v42, %v995_v44  ;;  %v1098_v53 = vadd.f32 %v1736_v42, %v1027_v45 }
 0x111   :  { %v1257_v54 = vsel %vm1129_vm10, %v1065_v34, %v1193_v46  ;;  %v1000_v56 = vmul.f32 %v1507_v38, %v1731_v40  ;;  %v1032_v57 = vmul.f32 %v1539_v39, %v1731_v40  ;;  %v1508_v58 = vpop.f32.mrf.mxu0  ;;  %v1540_v59 = vpop.f32.mrf.mxu1  ;;  %vm1132_vm12 = vcmp.ge.f32.partialorder %v1068_v50, 0.0 }
 0x112   :  { %v1289_v55 = vsel %vm1161_vm11, %v1097_v35, %v1225_v47  ;;  %1321 = vst [vmem:[#allocation8 + $0x20] sm:$0xff] %v1257_v54  ;;  %v1196_v60 = vmul.f32 0.2, %v1068_v50  ;;  %vm1164_vm13 = vcmp.ge.f32.partialorder %v1100_v51, 0.0  ;;  %v1228_v61 = vmul.f32 0.2, %v1100_v51 }
 0x113   :  { %1353 = vst [vmem:[#allocation8 + $0x120] sm:$0xff] %v1289_v55  ;;  %vm1130_vm14 = vcmp.ge.f32.partialorder %v1066_v52, 0.0  ;;  %v1194_v62 = vmul.f32 0.2, %v1066_v52  ;;  %vm1162_vm15 = vcmp.ge.f32.partialorder %v1098_v53, 0.0  ;;  %v568_v0 = vpop.f32.mrf.mxu0  ;;  %v696_v1 = vpop.f32.mrf.mxu1  ;;  %v1071_v4 = vadd.f32 %v1736_v42, %v1000_v56 }
 0x114   :  { %v1226_v63 = vmul.f32 0.2, %v1098_v53  ;;  %v1260_v2 = vsel %vm1132_vm12, %v1068_v50, %v1196_v60  ;;  %v1292_v3 = vsel %vm1164_vm13, %v1100_v51, %v1228_v61  ;;  %v1103_v5 = vadd.f32 %v1736_v42, %v1032_v57 }
 0x115   :  { %1324 = vst [vmem:[#allocation8 + $0x38] sm:$0xff] %v1260_v2  ;;  %1356 = vst [vmem:[#allocation8 + $0x138] sm:$0xff] %v1292_v3  ;;  %v1258_v6 = vsel %vm1130_vm14, %v1066_v52, %v1194_v62  ;;  %v998_v8 = vmul.f32 %v1731_v40, %v565_v48  ;;  %v1030_v9 = vmul.f32 %v1731_v40, %v693_v49  ;;  %v1511_v10 = vpop.f32.mrf.mxu0  ;;  %v1543_v11 = vpop.f32.mrf.mxu1  ;;  %vm1135_vm0 = vcmp.ge.f32.partialorder %v1071_v4, 0.0 }
 0x116   :  { %v1290_v7 = vsel %vm1162_vm15, %v1098_v53, %v1226_v63  ;;  %1322 = vst [vmem:[#allocation8 + $0x28] sm:$0xff] %v1258_v6  ;;  %v1199_v12 = vmul.f32 0.2, %v1071_v4  ;;  %vm1167_vm1 = vcmp.ge.f32.partialorder %v1103_v5, 0.0  ;;  %v1231_v13 = vmul.f32 0.2, %v1103_v5 }
 0x117   :  { %1354 = vst [vmem:[#allocation8 + $0x128] sm:$0xff] %v1290_v7  ;;  %v1069_v14 = vadd.f32 %v1736_v42, %v998_v8  ;;  %v1101_v15 = vadd.f32 %v1736_v42, %v1030_v9  ;;  %v1001_v16 = vmul.f32 %v1508_v58, %v1731_v40  ;;  %v1033_v17 = vmul.f32 %v1540_v59, %v1731_v40  ;;  %v581_v18 = vpop.f32.mrf.mxu0  ;;  %v709_v19 = vpop.f32.mrf.mxu1 }
 0x118   :  { %v1263_v20 = vsel %vm1135_vm0, %v1071_v4, %v1199_v12  ;;  %v1295_v21 = vsel %vm1167_vm1, %v1103_v5, %v1231_v13  ;;  %v999_v22 = vmul.f32 %v1731_v40, %v568_v0  ;;  %v1031_v23 = vmul.f32 %v1731_v40, %v696_v1 }
 0x119   :  { %1327 = vst [vmem:[#allocation8 + $0x50] sm:$0xff] %v1263_v20  ;;  %1359 = vst [vmem:[#allocation8 + $0x150] sm:$0xff] %v1295_v21  ;;  %vm1133_vm2 = vcmp.ge.f32.partialorder %v1069_v14, 0.0  ;;  %v1197_v24 = vmul.f32 0.2, %v1069_v14  ;;  %vm1165_vm3 = vcmp.ge.f32.partialorder %v1101_v15, 0.0  ;;  %v1512_v26 = vpop.f32.mrf.mxu0  ;;  %v1544_v27 = vpop.f32.mrf.mxu1  ;;  %v1072_v28 = vadd.f32 %v1736_v42, %v1001_v16 }
 0x11a   :  { %v1229_v25 = vmul.f32 0.2, %v1101_v15  ;;  %v1104_v29 = vadd.f32 %v1736_v42, %v1033_v17  ;;  %v1070_v30 = vadd.f32 %v1736_v42, %v999_v22  ;;  %v1102_v31 = vadd.f32 %v1736_v42, %v1031_v23 }
 0x11b   :  { %v1261_v32 = vsel %vm1133_vm2, %v1069_v14, %v1197_v24  ;;  %v1004_v34 = vmul.f32 %v1511_v10, %v1731_v40  ;;  %v1036_v35 = vmul.f32 %v1543_v11, %v1731_v40  ;;  %v584_v36 = vpop.f32.mrf.mxu0  ;;  %v712_v37 = vpop.f32.mrf.mxu1  ;;  %vm1136_vm4 = vcmp.ge.f32.partialorder %v1072_v28, 0.0 }
 0x11c   :  { %v1293_v33 = vsel %vm1165_vm3, %v1101_v15, %v1229_v25  ;;  %1325 = vst [vmem:[#allocation8 + $0x40] sm:$0xff] %v1261_v32  ;;  %v1200_v38 = vmul.f32 0.2, %v1072_v28  ;;  %vm1168_vm5 = vcmp.ge.f32.partialorder %v1104_v29, 0.0  ;;  %v1232_v39 = vmul.f32 0.2, %v1104_v29 }
 0x11d   :  { %1357 = vst [vmem:[#allocation8 + $0x140] sm:$0xff] %v1293_v33  ;;  %vm1134_vm6 = vcmp.ge.f32.partialorder %v1070_v30, 0.0  ;;  %v1198_v41 = vmul.f32 0.2, %v1070_v30  ;;  %vm1166_vm7 = vcmp.ge.f32.partialorder %v1102_v31, 0.0  ;;  %v1515_v44 = vpop.f32.mrf.mxu0  ;;  %v1547_v45 = vpop.f32.mrf.mxu1  ;;  %v1075_v48 = vadd.f32 %v1736_v42, %v1004_v34 }
 0x11e   :  { %v1230_v43 = vmul.f32 0.2, %v1102_v31  ;;  %v1264_v46 = vsel %vm1136_vm4, %v1072_v28, %v1200_v38  ;;  %v1296_v47 = vsel %vm1168_vm5, %v1104_v29, %v1232_v39  ;;  %v1107_v49 = vadd.f32 %v1736_v42, %v1036_v35 }
 0x11f   :  { %1328 = vst [vmem:[#allocation8 + $0x58] sm:$0xff] %v1264_v46  ;;  %1360 = vst [vmem:[#allocation8 + $0x158] sm:$0xff] %v1296_v47  ;;  %v1262_v50 = vsel %vm1134_vm6, %v1070_v30, %v1198_v41  ;;  %v1002_v52 = vmul.f32 %v1731_v40, %v581_v18  ;;  %v1034_v53 = vmul.f32 %v1731_v40, %v709_v19  ;;  %v597_v54 = vpop.f32.mrf.mxu0  ;;  %v725_v55 = vpop.f32.mrf.mxu1  ;;  %vm1139_vm8 = vcmp.ge.f32.partialorder %v1075_v48, 0.0 }
 0x120   :  { %v1294_v51 = vsel %vm1166_vm7, %v1102_v31, %v1230_v43  ;;  %1326 = vst [vmem:[#allocation8 + $0x48] sm:$0xff] %v1262_v50  ;;  %v1203_v56 = vmul.f32 0.2, %v1075_v48  ;;  %vm1171_vm9 = vcmp.ge.f32.partialorder %v1107_v49, 0.0  ;;  %v1235_v57 = vmul.f32 0.2, %v1107_v49 }
 0x121   :  { %1358 = vst [vmem:[#allocation8 + $0x148] sm:$0xff] %v1294_v51  ;;  %v1073_v58 = vadd.f32 %v1736_v42, %v1002_v52  ;;  %v1105_v59 = vadd.f32 %v1736_v42, %v1034_v53  ;;  %v1005_v60 = vmul.f32 %v1512_v26, %v1731_v40  ;;  %v1037_v61 = vmul.f32 %v1544_v27, %v1731_v40  ;;  %v1516_v62 = vpop.f32.mrf.mxu0  ;;  %v1548_v63 = vpop.f32.mrf.mxu1 }
 0x122   :  { %v1267_v0 = vsel %vm1139_vm8, %v1075_v48, %v1203_v56  ;;  %v1299_v1 = vsel %vm1171_vm9, %v1107_v49, %v1235_v57  ;;  %v1003_v2 = vmul.f32 %v1731_v40, %v584_v36  ;;  %v1035_v3 = vmul.f32 %v1731_v40, %v712_v37 }
 0x123   :  { %1331 = vst [vmem:[#allocation8 + $0x70] sm:$0xff] %v1267_v0  ;;  %1363 = vst [vmem:[#allocation8 + $0x170] sm:$0xff] %v1299_v1  ;;  %vm1137_vm10 = vcmp.ge.f32.partialorder %v1073_v58, 0.0  ;;  %v1201_v4 = vmul.f32 0.2, %v1073_v58  ;;  %vm1169_vm11 = vcmp.ge.f32.partialorder %v1105_v59, 0.0  ;;  %v600_v6 = vpop.f32.mrf.mxu0  ;;  %v728_v7 = vpop.f32.mrf.mxu1  ;;  %v1076_v8 = vadd.f32 %v1736_v42, %v1005_v60 }
 0x124   :  { %v1233_v5 = vmul.f32 0.2, %v1105_v59  ;;  %v1108_v9 = vadd.f32 %v1736_v42, %v1037_v61  ;;  %v1074_v10 = vadd.f32 %v1736_v42, %v1003_v2  ;;  %v1106_v11 = vadd.f32 %v1736_v42, %v1035_v3 }
 0x125   :  { %v1265_v12 = vsel %vm1137_vm10, %v1073_v58, %v1201_v4  ;;  %v1008_v14 = vmul.f32 %v1515_v44, %v1731_v40  ;;  %v1040_v15 = vmul.f32 %v1547_v45, %v1731_v40  ;;  %v1519_v16 = vpop.f32.mrf.mxu0  ;;  %v1551_v17 = vpop.f32.mrf.mxu1  ;;  %vm1140_vm12 = vcmp.ge.f32.partialorder %v1076_v8, 0.0 }
 0x126   :  { %v1297_v13 = vsel %vm1169_vm11, %v1105_v59, %v1233_v5  ;;  %1329 = vst [vmem:[#allocation8 + $0x60] sm:$0xff] %v1265_v12  ;;  %v1204_v18 = vmul.f32 0.2, %v1076_v8  ;;  %vm1172_vm13 = vcmp.ge.f32.partialorder %v1108_v9, 0.0  ;;  %v1236_v19 = vmul.f32 0.2, %v1108_v9 }
 0x127   :  { %1361 = vst [vmem:[#allocation8 + $0x160] sm:$0xff] %v1297_v13  ;;  %vm1138_vm14 = vcmp.ge.f32.partialorder %v1074_v10, 0.0  ;;  %v1202_v20 = vmul.f32 0.2, %v1074_v10  ;;  %vm1170_vm15 = vcmp.ge.f32.partialorder %v1106_v11, 0.0  ;;  %v1804_v22 = vpop.f32.mrf.mxu0  ;;  %v1806_v23 = vpop.f32.mrf.mxu1  ;;  %v1079_v26 = vadd.f32 %v1736_v42, %v1008_v14 }
 0x128   :  { %v1234_v21 = vmul.f32 0.2, %v1106_v11  ;;  %v1268_v24 = vsel %vm1140_vm12, %v1076_v8, %v1204_v18  ;;  %v1300_v25 = vsel %vm1172_vm13, %v1108_v9, %v1236_v19  ;;  %v1111_v27 = vadd.f32 %v1736_v42, %v1040_v15 }
 0x129   :  { %1332 = vst [vmem:[#allocation8 + $0x78] sm:$0xff] %v1268_v24  ;;  %1364 = vst [vmem:[#allocation8 + $0x178] sm:$0xff] %v1300_v25  ;;  %v1266_v28 = vsel %vm1138_vm14, %v1074_v10, %v1202_v20  ;;  %v1006_v30 = vmul.f32 %v1731_v40, %v597_v54  ;;  %v1038_v31 = vmul.f32 %v1731_v40, %v725_v55  ;;  %v1812_v32 = vpop.f32.mrf.mxu0  ;;  %v1814_v33 = vpop.f32.mrf.mxu1  ;;  %vm1143_vm0 = vcmp.ge.f32.partialorder %v1079_v26, 0.0 }
 0x12a   :  { %v1298_v29 = vsel %vm1170_vm15, %v1106_v11, %v1234_v21  ;;  %1330 = vst [vmem:[#allocation8 + $0x68] sm:$0xff] %v1266_v28  ;;  %v1207_v34 = vmul.f32 0.2, %v1079_v26  ;;  %vm1175_vm1 = vcmp.ge.f32.partialorder %v1111_v27, 0.0  ;;  %v1239_v35 = vmul.f32 0.2, %v1111_v27 }
 0x12b   :  { %1362 = vst [vmem:[#allocation8 + $0x168] sm:$0xff] %v1298_v29  ;;  %v1077_v36 = vadd.f32 %v1736_v42, %v1006_v30  ;;  %v1109_v37 = vadd.f32 %v1736_v42, %v1038_v31  ;;  %v1009_v38 = vmul.f32 %v1516_v62, %v1731_v40  ;;  %v1041_v39 = vmul.f32 %v1548_v63, %v1731_v40  ;;  %v616_v41 = vpop.f32.mrf.mxu0  ;;  %v744_v43 = vpop.f32.mrf.mxu1 }
 0x12c   :  { %v1271_v44 = vsel %vm1143_vm0, %v1079_v26, %v1207_v34  ;;  %v1303_v45 = vsel %vm1175_vm1, %v1111_v27, %v1239_v35  ;;  %v1007_v46 = vmul.f32 %v1731_v40, %v600_v6  ;;  %v1039_v47 = vmul.f32 %v1731_v40, %v728_v7 }
 0x12d   :  { %1335 = vst [vmem:[#allocation8 + $0x90] sm:$0xff] %v1271_v44  ;;  %1367 = vst [vmem:[#allocation8 + $0x190] sm:$0xff] %v1303_v45  ;;  %vm1141_vm2 = vcmp.ge.f32.partialorder %v1077_v36, 0.0  ;;  %v1205_v48 = vmul.f32 0.2, %v1077_v36  ;;  %vm1173_vm3 = vcmp.ge.f32.partialorder %v1109_v37, 0.0  ;;  %v1822_v50 = vpop.f32.mrf.mxu0  ;;  %v1555_v51 = vpop.f32.mrf.mxu1  ;;  %v1080_v52 = vadd.f32 %v1736_v42, %v1009_v38 }
 0x12e   :  { %v1237_v49 = vmul.f32 0.2, %v1109_v37  ;;  %v1112_v53 = vadd.f32 %v1736_v42, %v1041_v39  ;;  %v1078_v54 = vadd.f32 %v1736_v42, %v1007_v46  ;;  %v1110_v55 = vadd.f32 %v1736_v42, %v1039_v47 }
 0x12f   :  { %v1269_v56 = vsel %vm1141_vm2, %v1077_v36, %v1205_v48  ;;  %v1012_v58 = vmul.f32 %v1519_v16, %v1731_v40  ;;  %v1044_v59 = vmul.f32 %v1551_v17, %v1731_v40  ;;  %v1830_v60 = vpop.f32.mrf.mxu0  ;;  %v1832_v61 = vpop.f32.mrf.mxu1  ;;  %vm1144_vm4 = vcmp.ge.f32.partialorder %v1080_v52, 0.0 }
 0x130   :  { %v1301_v57 = vsel %vm1173_vm3, %v1109_v37, %v1237_v49  ;;  %1333 = vst [vmem:[#allocation8 + $0x80] sm:$0xff] %v1269_v56  ;;  %v1208_v62 = vmul.f32 0.2, %v1080_v52  ;;  %vm1176_vm5 = vcmp.ge.f32.partialorder %v1112_v53, 0.0  ;;  %v1240_v63 = vmul.f32 0.2, %v1112_v53 }
 0x131   :  { %1365 = vst [vmem:[#allocation8 + $0x180] sm:$0xff] %v1301_v57  ;;  %vm1142_vm6 = vcmp.ge.f32.partialorder %v1078_v54, 0.0  ;;  %v1206_v0 = vmul.f32 0.2, %v1078_v54  ;;  %vm1174_vm7 = vcmp.ge.f32.partialorder %v1110_v55, 0.0  ;;  %v1083_v4 = vadd.f32 %v1736_v42, %v1012_v58  ;;  %v1524_v10 = vpop.f32.mrf.mxu0  ;;  %v1556_v11 = vpop.f32.mrf.mxu1 }
 0x132   :  { %v1238_v1 = vmul.f32 0.2, %v1110_v55  ;;  %v1272_v2 = vsel %vm1144_vm4, %v1080_v52, %v1208_v62  ;;  %v1304_v3 = vsel %vm1176_vm5, %v1112_v53, %v1240_v63  ;;  %v1115_v5 = vadd.f32 %v1736_v42, %v1044_v59 }
 0x133   :  { %1336 = vst [vmem:[#allocation8 + $0x98] sm:$0xff] %v1272_v2  ;;  %1368 = vst [vmem:[#allocation8 + $0x198] sm:$0xff] %v1304_v3  ;;  %v1270_v6 = vsel %vm1142_vm6, %v1078_v54, %v1206_v0  ;;  %v1010_v8 = vmul.f32 %v1731_v40, %v1804_v22  ;;  %v1042_v9 = vmul.f32 %v1731_v40, %v1806_v23  ;;  %vm1147_vm8 = vcmp.ge.f32.partialorder %v1083_v4, 0.0  ;;  %v632_v24 = vpop.f32.mrf.mxu0  ;;  %v760_v25 = vpop.f32.mrf.mxu1 }
 0x134   :  { %v1302_v7 = vsel %vm1174_vm7, %v1110_v55, %v1238_v1  ;;  %1334 = vst [vmem:[#allocation8 + $0x88] sm:$0xff] %v1270_v6  ;;  %v1211_v12 = vmul.f32 0.2, %v1083_v4  ;;  %vm1179_vm9 = vcmp.ge.f32.partialorder %v1115_v5, 0.0  ;;  %v1243_v13 = vmul.f32 0.2, %v1115_v5 }
 0x135   :  { %1366 = vst [vmem:[#allocation8 + $0x188] sm:$0xff] %v1302_v7  ;;  %v1081_v14 = vadd.f32 %v1736_v42, %v1010_v8  ;;  %v1113_v15 = vadd.f32 %v1736_v42, %v1042_v9  ;;  %v1013_v16 = vmul.f32 %v1812_v32, %v1731_v40  ;;  %v1045_v17 = vmul.f32 %v1814_v33, %v1731_v40  ;;  %v1527_v38 = vpop.f32.mrf.mxu0  ;;  %v1559_v39 = vpop.f32.mrf.mxu1 }
 0x136   :  { %v1275_v18 = vsel %vm1147_vm8, %v1083_v4, %v1211_v12  ;;  %v1307_v19 = vsel %vm1179_vm9, %v1115_v5, %v1243_v13  ;;  %v1011_v20 = vmul.f32 %v1731_v40, %v616_v41  ;;  %v1043_v21 = vmul.f32 %v1731_v40, %v744_v43 }
 0x137   :  { %1339 = vst [vmem:[#allocation8 + $0xb0] sm:$0xff] %v1275_v18  ;;  %1371 = vst [vmem:[#allocation8 + $0x1b0] sm:$0xff] %v1307_v19  ;;  %vm1145_vm10 = vcmp.ge.f32.partialorder %v1081_v14, 0.0  ;;  %v1209_v22 = vmul.f32 0.2, %v1081_v14  ;;  %vm1177_vm11 = vcmp.ge.f32.partialorder %v1113_v15, 0.0  ;;  %v1084_v26 = vadd.f32 %v1736_v42, %v1013_v16  ;;  %v645_v56 = vpop.f32.mrf.mxu0  ;;  %v773_v57 = vpop.f32.mrf.mxu1 }
 0x138   :  { %v1241_v23 = vmul.f32 0.2, %v1113_v15  ;;  %v1116_v27 = vadd.f32 %v1736_v42, %v1045_v17  ;;  %v1082_v28 = vadd.f32 %v1736_v42, %v1011_v20  ;;  %v1114_v29 = vadd.f32 %v1736_v42, %v1043_v21 }
 0x139   :  { %v1273_v30 = vsel %vm1145_vm10, %v1081_v14, %v1209_v22  ;;  %v1016_v32 = vmul.f32 %v1822_v50, %v1731_v40  ;;  %v1048_v33 = vmul.f32 %v1555_v51, %v1731_v40  ;;  %vm1148_vm12 = vcmp.ge.f32.partialorder %v1084_v26, 0.0  ;;  %v1528_v8 = vpop.f32.mrf.mxu0  ;;  %v1560_v9 = vpop.f32.mrf.mxu1 }
 0x13a   :  { %v1305_v31 = vsel %vm1177_vm11, %v1113_v15, %v1241_v23  ;;  %1337 = vst [vmem:[#allocation8 + $0xa0] sm:$0xff] %v1273_v30  ;;  %v1212_v34 = vmul.f32 0.2, %v1084_v26  ;;  %vm1180_vm13 = vcmp.ge.f32.partialorder %v1116_v27, 0.0  ;;  %v1244_v35 = vmul.f32 0.2, %v1116_v27 }
 0x13b   :  { %1369 = vst [vmem:[#allocation8 + $0x1a0] sm:$0xff] %v1305_v31  ;;  %vm1146_vm14 = vcmp.ge.f32.partialorder %v1082_v28, 0.0  ;;  %v1210_v36 = vmul.f32 0.2, %v1082_v28  ;;  %vm1178_vm15 = vcmp.ge.f32.partialorder %v1114_v29, 0.0  ;;  %v1087_v44 = vadd.f32 %v1736_v42, %v1016_v32  ;;  %v648_v22 = vpop.f32.mrf.mxu0  ;;  %v776_v23 = vpop.f32.mrf.mxu1 }
 0x13c   :  { %v1242_v37 = vmul.f32 0.2, %v1114_v29  ;;  %v1276_v41 = vsel %vm1148_vm12, %v1084_v26, %v1212_v34  ;;  %v1308_v43 = vsel %vm1180_vm13, %v1116_v27, %v1244_v35  ;;  %v1119_v45 = vadd.f32 %v1736_v42, %v1048_v33 }
 0x13d   :  { %1340 = vst [vmem:[#allocation8 + $0xb8] sm:$0xff] %v1276_v41  ;;  %1372 = vst [vmem:[#allocation8 + $0x1b8] sm:$0xff] %v1308_v43  ;;  %v1274_v46 = vsel %vm1146_vm14, %v1082_v28, %v1210_v36  ;;  %v1014_v48 = vmul.f32 %v1731_v40, %v1830_v60  ;;  %v1046_v49 = vmul.f32 %v1731_v40, %v1832_v61  ;;  %vm1151_vm0 = vcmp.ge.f32.partialorder %v1087_v44, 0.0 }
 0x13e   :  { %v1306_v47 = vsel %vm1178_vm15, %v1114_v29, %v1242_v37  ;;  %1338 = vst [vmem:[#allocation8 + $0xa8] sm:$0xff] %v1274_v46  ;;  %v1215_v50 = vmul.f32 0.2, %v1087_v44  ;;  %vm1183_vm1 = vcmp.ge.f32.partialorder %v1119_v45, 0.0  ;;  %v1247_v51 = vmul.f32 0.2, %v1119_v45 }
 0x13f   :  { %1370 = vst [vmem:[#allocation8 + $0x1a8] sm:$0xff] %v1306_v47  ;;  %v1085_v52 = vadd.f32 %v1736_v42, %v1014_v48  ;;  %v1117_v53 = vadd.f32 %v1736_v42, %v1046_v49  ;;  %v1017_v54 = vmul.f32 %v1524_v10, %v1731_v40  ;;  %v1049_v55 = vmul.f32 %v1556_v11, %v1731_v40 }
 0x140   :  { %v1279_v58 = vsel %vm1151_vm0, %v1087_v44, %v1215_v50  ;;  %v1311_v59 = vsel %vm1183_vm1, %v1119_v45, %v1247_v51  ;;  %v1015_v60 = vmul.f32 %v1731_v40, %v632_v24  ;;  %v1047_v61 = vmul.f32 %v1731_v40, %v760_v25 }
 0x141   :  { %1343 = vst [vmem:[#allocation8 + $0xd0] sm:$0xff] %v1279_v58  ;;  %1375 = vst [vmem:[#allocation8 + $0x1d0] sm:$0xff] %v1311_v59  ;;  %vm1149_vm2 = vcmp.ge.f32.partialorder %v1085_v52, 0.0  ;;  %v1213_v62 = vmul.f32 0.2, %v1085_v52  ;;  %vm1181_vm3 = vcmp.ge.f32.partialorder %v1117_v53, 0.0  ;;  %v1088_v0 = vadd.f32 %v1736_v42, %v1017_v54 }
 0x142   :  { %v1245_v63 = vmul.f32 0.2, %v1117_v53  ;;  %v1120_v1 = vadd.f32 %v1736_v42, %v1049_v55  ;;  %v1086_v2 = vadd.f32 %v1736_v42, %v1015_v60  ;;  %v1118_v3 = vadd.f32 %v1736_v42, %v1047_v61 }
 0x143   :  { %v1277_v4 = vsel %vm1149_vm2, %v1085_v52, %v1213_v62  ;;  %v1020_v6 = vmul.f32 %v1527_v38, %v1731_v40  ;;  %v1052_v7 = vmul.f32 %v1559_v39, %v1731_v40  ;;  %vm1152_vm4 = vcmp.ge.f32.partialorder %v1088_v0, 0.0 }
 0x144   :  { %v1309_v5 = vsel %vm1181_vm3, %v1117_v53, %v1245_v63  ;;  %1341 = vst [vmem:[#allocation8 + $0xc0] sm:$0xff] %v1277_v4  ;;  %v1216_v10 = vmul.f32 0.2, %v1088_v0  ;;  %vm1184_vm5 = vcmp.ge.f32.partialorder %v1120_v1, 0.0  ;;  %v1248_v11 = vmul.f32 0.2, %v1120_v1 }
 0x145   :  { %1373 = vst [vmem:[#allocation8 + $0x1c0] sm:$0xff] %v1309_v5  ;;  %vm1150_vm6 = vcmp.ge.f32.partialorder %v1086_v2, 0.0  ;;  %v1214_v12 = vmul.f32 0.2, %v1086_v2  ;;  %vm1182_vm7 = vcmp.ge.f32.partialorder %v1118_v3, 0.0  ;;  %v1091_v16 = vadd.f32 %v1736_v42, %v1020_v6 }
 0x146   :  { %v1246_v13 = vmul.f32 0.2, %v1118_v3  ;;  %v1280_v14 = vsel %vm1152_vm4, %v1088_v0, %v1216_v10  ;;  %v1312_v15 = vsel %vm1184_vm5, %v1120_v1, %v1248_v11  ;;  %v1123_v17 = vadd.f32 %v1736_v42, %v1052_v7 }
 0x147   :  { %1344 = vst [vmem:[#allocation8 + $0xd8] sm:$0xff] %v1280_v14  ;;  %1376 = vst [vmem:[#allocation8 + $0x1d8] sm:$0xff] %v1312_v15  ;;  %v1278_v18 = vsel %vm1150_vm6, %v1086_v2, %v1214_v12  ;;  %v1018_v20 = vmul.f32 %v1731_v40, %v645_v56  ;;  %v1050_v21 = vmul.f32 %v1731_v40, %v773_v57  ;;  %vm1155_vm8 = vcmp.ge.f32.partialorder %v1091_v16, 0.0 }
 0x148   :  { %v1310_v19 = vsel %vm1182_vm7, %v1118_v3, %v1246_v13  ;;  %1342 = vst [vmem:[#allocation8 + $0xc8] sm:$0xff] %v1278_v18  ;;  %v1219_v24 = vmul.f32 0.2, %v1091_v16  ;;  %vm1187_vm9 = vcmp.ge.f32.partialorder %v1123_v17, 0.0  ;;  %v1251_v25 = vmul.f32 0.2, %v1123_v17 }
 0x149   :  { %1374 = vst [vmem:[#allocation8 + $0x1c8] sm:$0xff] %v1310_v19  ;;  %v1089_v26 = vadd.f32 %v1736_v42, %v1018_v20  ;;  %v1121_v27 = vadd.f32 %v1736_v42, %v1050_v21  ;;  %v1021_v28 = vmul.f32 %v1528_v8, %v1731_v40  ;;  %v1053_v29 = vmul.f32 %v1560_v9, %v1731_v40 }
 0x14a   :  { %v1283_v30 = vsel %vm1155_vm8, %v1091_v16, %v1219_v24  ;;  %v1315_v31 = vsel %vm1187_vm9, %v1123_v17, %v1251_v25  ;;  %v1019_v32 = vmul.f32 %v1731_v40, %v648_v22  ;;  %v1051_v33 = vmul.f32 %v1731_v40, %v776_v23 }
 0x14b   :  { %1347 = vst [vmem:[#allocation8 + $0xf0] sm:$0xff] %v1283_v30  ;;  %1379 = vst [vmem:[#allocation8 + $0x1f0] sm:$0xff] %v1315_v31  ;;  %vm1153_vm10 = vcmp.ge.f32.partialorder %v1089_v26, 0.0  ;;  %v1217_v34 = vmul.f32 0.2, %v1089_v26  ;;  %vm1185_vm11 = vcmp.ge.f32.partialorder %v1121_v27, 0.0  ;;  %v1092_v36 = vadd.f32 %v1736_v42, %v1021_v28 }
 0x14c   :  { %v1249_v35 = vmul.f32 0.2, %v1121_v27  ;;  %v1124_v37 = vadd.f32 %v1736_v42, %v1053_v29  ;;  %v1090_v38 = vadd.f32 %v1736_v42, %v1019_v32  ;;  %v1122_v39 = vadd.f32 %v1736_v42, %v1051_v33 }
 0x14d   :  { %v1281_v41 = vsel %vm1153_vm10, %v1089_v26, %v1217_v34  ;;  %vm1156_vm12 = vcmp.ge.f32.partialorder %v1092_v36, 0.0  ;;  %v1220_v40 = vmul.f32 0.2, %v1092_v36 }
 0x14e   :  { %v1313_v43 = vsel %vm1185_vm11, %v1121_v27, %v1249_v35  ;;  %1345 = vst [vmem:[#allocation8 + $0xe0] sm:$0xff] %v1281_v41  ;;  %vm1188_vm13 = vcmp.ge.f32.partialorder %v1124_v37, 0.0  ;;  %v1252_v44 = vmul.f32 0.2, %v1124_v37  ;;  %vm1154_vm14 = vcmp.ge.f32.partialorder %v1090_v38, 0.0 }
 0x14f   :  { %1377 = vst [vmem:[#allocation8 + $0x1e0] sm:$0xff] %v1313_v43  ;;  %v1218_v45 = vmul.f32 0.2, %v1090_v38  ;;  %vm1186_vm15 = vcmp.ge.f32.partialorder %v1122_v39, 0.0  ;;  %v1250_v46 = vmul.f32 0.2, %v1122_v39  ;;  %v1284_v47 = vsel %vm1156_vm12, %v1092_v36, %v1220_v40 }
 0x150   :  { %v1316_v48 = vsel %vm1188_vm13, %v1124_v37, %v1252_v44  ;;  %1348 = vst [vmem:[#allocation8 + $0xf8] sm:$0xff] %v1284_v47 }
 0x151   :  { %1380 = vst [vmem:[#allocation8 + $0x1f8] sm:$0xff] %v1316_v48  ;;  %v1282_v42 = vsel %vm1154_vm14, %v1090_v38, %v1218_v45  ;;  %v1314_v49 = vsel %vm1186_vm15, %v1122_v39, %v1250_v46 }
 0x152   :  { %1346 = vst [vmem:[#allocation8 + $0xe8] sm:$0xff] %v1282_v42  ;;  %1378 = vst [vmem:[#allocation8 + $0x1e8] sm:$0xff] %v1314_v49 }
 0x153   :  { %1675 = shalt.err (!%p1672_p0)
}
 0x154   :  { %s1695_s30 = smov 128   ;;  %s1696_s5 = smov 8  }
 0x155   :  { %1392 = dma.vmem_to_hbm [thread:$0]  %s1387_s3, 8192, %s1894_s4, [#allocation5], %s1695_s30, %s1695_s30, %s1696_s5  }
 0x156   :  { %1688 = dma.done.wait [#allocation5], 8192  }
 0x157   :  { %1689 = vsyncadd [#allocation5], 4294959104 }
 0x158   :  { %1396 = vsyncpa [#allocation4], 1 }
 0x159   :  { %1397 = vsyncpa [#allocation7], 1 }
 0x15a   :  { %1398 = vsyncpa [#allocation5], 1 }

</bundles_post_ra>
